<compile_context>
chip_gen: v6e
topology: v6e:2x2x1
jax: 0.10.0
libtpu: 0.0.40
codegen_flags: <defaults>
</compile_context>

<pallas_src>
import functools

import jax
import jax.numpy as jnp
from jax import lax
from jax.experimental import pallas as pl
from jax.experimental.pallas import tpu as pltpu

LANES = 128


def _focal_loss_kernel(p_ref, t_ref, o_ref, *, alpha, gamma, total, row_tile,
                       steps, last_tile, mask_tail, binary_targets):
    s = pl.program_id(1)          # reduction step within this core's slice

    @pl.when(s == 0)
    def _():
        o_ref[...] = jnp.zeros((8, LANES), jnp.float32)

    p = p_ref[...].astype(jnp.float32)
    t = t_ref[...].astype(jnp.float32)

    def tile_partial(p, t):
        """Focal loss of one (row_tile, 128) tile folded to an (8, 128) partial."""
        if binary_targets:
            # Opt-in fast path for hard 0/1 targets: 1 log per element instead
            # of 2 logs + 1 exp (EUP is the binding unit on v7x / bf16 v6e).
            # pt == exp(-bce) except for p_t < e^-100 (f32 denormal range).
            p_t = jnp.where(t >= 0.5, p, 1.0 - p)
            bce = -jnp.maximum(jnp.log(p_t), -100.0)
            pt = p_t
        else:
            # Exact PyTorch BCELoss semantics (soft targets, log clamp at -100
            # applied BEFORE the multiply).
            log_p = jnp.maximum(jnp.log(p), -100.0)
            log_1mp = jnp.maximum(jnp.log(1.0 - p), -100.0)
            bce = -(t * log_p + (1.0 - t) * log_1mp)
            pt = jnp.exp(-bce)
        omp = 1.0 - pt
        modulator = omp * omp if gamma == 2.0 else omp ** gamma
        focal = alpha * modulator * bce
        # (row_tile, 128) -> (row_tile//8, 8, 128) is a tile-aligned (free)
        # reshape; summing axis 0 is vreg-to-vreg VPU adds (no XLU).
        return jnp.sum(focal.reshape(row_tile // 8, 8, LANES), axis=0)

    if not mask_tail:
        o_ref[...] += tile_partial(p, t)
    else:
        c = pl.program_id(0)
        is_tail = (c * steps + s) == last_tile

        @pl.when(jnp.logical_not(is_tail))
        def _():
            o_ref[...] += tile_partial(p, t)

        @pl.when(is_tail)
        def _():
            # Neutralize out-of-range elements (ragged tail of the last block)
            # with p = 1, t = 1 BEFORE the logs -> bce = 0, focal = 0 exactly,
            # so garbage in the partially-loaded block never contributes.
            row = last_tile * row_tile + lax.broadcasted_iota(jnp.int32, p.shape, 0)
            lane = lax.broadcasted_iota(jnp.int32, p.shape, 1)
            rows_full, rem = divmod(total, LANES)
            valid = row < rows_full
            if rem:
                valid = jnp.logical_or(
                    valid, jnp.logical_and(row == rows_full, lane < rem))
            o_ref[...] += tile_partial(jnp.where(valid, p, 1.0),
                                       jnp.where(valid, t, 1.0))


def _default_num_cores():
    """Best-effort TensorCore-count query (2 on v7x, 1 on v5e/v6e)."""
    try:
        info = pltpu.get_tpu_info()
        for name in ("num_cores", "core_count", "num_tensorcores",
                     "tensor_core_count", "num_cores_per_chip", "cores_per_chip"):
            n = getattr(info, name, None)
            if isinstance(n, int) and n in (1, 2):
                return n
    except Exception:
        pass
    # Unknown: keep a 2-way leading "parallel" axis.  On single-TC chips it is
    # just a length-2 serial loop (same total step count, one extra 4 KiB
    # partial write); on v7x it lets each TensorCore reduce half the tiles.
    return 2


def focal_loss(inputs, targets, alpha=0.25, gamma=2.0, *, row_tile=2048,
               num_cores=None, binary_targets=False):
    """Pallas TPU FocalLoss.forward (returns scalar float32).

    Inputs/targets keep their dtype (the kernel upcasts per tile), so passing
    bf16 targets (exact for 0/1 labels) halves their HBM traffic on v5e/v6e.
    Set binary_targets=True only if targets are exactly 0/1 (fewer EUP ops).
    """
    assert inputs.shape == targets.shape
    total = int(inputs.size)

    p_flat = inputs.reshape(-1)
    t_flat = targets.reshape(-1)

    # View the flat data as a lane-dense (rows, 128) slab.  reshape of a
    # contiguous array is free; a pad (HBM copy) only remains when the element
    # count is not a multiple of 128 (<= 127 extra elems) ...
    if total % LANES:
        lane_pad = LANES - total % LANES
        p_flat = jnp.pad(p_flat, (0, lane_pad), constant_values=1.0)
        t_flat = jnp.pad(t_flat, (0, lane_pad), constant_values=1.0)
    n_rows = int(p_flat.size) // LANES

    rt = max(16, (int(row_tile) // 16) * 16)
    if n_rows >= rt:
        row_tile = rt                    # ragged last block handled in-kernel
    else:
        # ... or when the whole input is a single small tile (cheap): round the
        # row count up to a multiple of 16 so the block stays sublane-tileable.
        rows_pad_to = pl.cdiv(n_rows, 16) * 16
        if rows_pad_to != n_rows:
            rpad = (rows_pad_to - n_rows) * LANES
            p_flat = jnp.pad(p_flat, (0, rpad), constant_values=1.0)
            t_flat = jnp.pad(t_flat, (0, rpad), constant_values=1.0)
            n_rows = rows_pad_to
        row_tile = n_rows

    p2d = p_flat.reshape(n_rows, LANES)
    t2d = t_flat.reshape(n_rows, LANES)

    n_tiles = pl.cdiv(n_rows, row_tile)
    if num_cores is None:
        num_cores = _default_num_cores()
    # Only split across cores when it divides evenly (no fully-OOB blocks).
    cores = num_cores if (num_cores > 1 and n_tiles % num_cores == 0) else 1
    steps = n_tiles // cores

    mask_tail = (n_tiles * row_tile * LANES) != total

    kernel = functools.partial(
        _focal_loss_kernel,
        alpha=float(alpha), gamma=float(gamma), total=total,
        row_tile=row_tile, steps=steps, last_tile=n_tiles - 1,
        mask_tail=mask_tail, binary_targets=bool(binary_targets))

    partials = pl.pallas_call(
        kernel,
        out_shape=jax.ShapeDtypeStruct((cores * 8, LANES), jnp.float32),
        grid_spec=pltpu.PrefetchScalarGridSpec(
            num_scalar_prefetch=0,
            grid=(cores, steps),
            in_specs=[
                pl.BlockSpec((row_tile, LANES), lambda c, s: (c * steps + s, 0)),
                pl.BlockSpec((row_tile, LANES), lambda c, s: (c * steps + s, 0)),
            ],
            out_specs=pl.BlockSpec((8, LANES), lambda c, s: (c, 0)),
        ),
        compiler_params=pltpu.CompilerParams(
            dimension_semantics=("parallel", "arbitrary"),
            vmem_limit_bytes=32 * 1024 * 1024,
        ),
    )(p2d, t2d)

    # Tiny (cores*8, 128) partial slab -> scalar mean (keeps many independent
    # accumulation lanes for f32 numerics).
    return jnp.sum(partials) / jnp.float32(total)


def _reference_focal_loss(inputs, targets, alpha=0.25, gamma=2.0):
    p = inputs.astype(jnp.float32)
    t = targets.astype(jnp.float32)
    log_p = jnp.maximum(jnp.log(p), -100.0)
    log_1mp = jnp.maximum(jnp.log(1.0 - p), -100.0)
    bce = -(t * log_p + (1.0 - t) * log_1mp)
    pt = jnp.exp(-bce)
    return jnp.mean(alpha * (1.0 - pt) ** gamma * bce)


if __name__ == "__main__":
    key = jax.random.PRNGKey(0)
    k1, k2, k3, k4 = jax.random.split(key, 4)

    # Small NCHW-shaped predictions (probabilities) and binary targets.
    shape = (2, 4, 16, 16)
    inputs = jax.nn.sigmoid(jax.random.normal(k1, shape, dtype=jnp.float32))
    targets = (jax.random.uniform(k2, shape) > 0.5).astype(jnp.float32)

    loss = jax.block_until_ready(focal_loss(inputs, targets))
    ref = _reference_focal_loss(inputs, targets)
    assert jnp.allclose(loss, ref, rtol=1e-5, atol=1e-6), (loss, ref)

    # Ragged case: element count not a multiple of 128 and rows not a multiple
    # of the tile -> exercises the in-kernel tail mask (no full-array pad).
    shape2 = (26, 131)
    inputs2 = jax.nn.sigmoid(jax.random.normal(k3, shape2, dtype=jnp.float32))
    targets2 = (jax.random.uniform(k4, shape2) > 0.5).astype(jnp.float32)
    loss2 = jax.block_until_ready(focal_loss(inputs2, targets2, row_tile=16))
    ref2 = _reference_focal_loss(inputs2, targets2)
    assert jnp.allclose(loss2, ref2, rtol=1e-5, atol=1e-6), (loss2, ref2)

    print("KERNEL_OK")
</pallas_src>

<mosaic_0001>
module attributes {stable_mosaic.version = 11 : i64} {
  func.func @_focal_loss_kernel(%arg0: i32, %arg1: i32, %arg2: memref<16x128xf32, #tpu.memory_space<vmem>>, %arg3: memref<16x128xf32, #tpu.memory_space<vmem>>, %arg4: memref<8x128xf32, #tpu.memory_space<vmem>>) attributes {dimension_semantics = [#tpu.dimension_semantics<parallel>, #tpu.dimension_semantics<arbitrary>], iteration_bounds = array<i64: 1, 1>, scalar_prefetch = 0 : i64, scratch_operands = 0 : i64, tpu.core_type = #tpu.core_type<tc>, window_params = [{transform_indices = @transform_0, window_bounds = array<i64: 16, 128>}, {transform_indices = @transform_1, window_bounds = array<i64: 16, 128>}, {transform_indices = @transform_2, window_bounds = array<i64: 8, 128>}]} {
    %c0_i32 = arith.constant 0 : i32
    %0 = arith.cmpi eq, %arg1, %c0_i32 : i32
    %1 = arith.extui %0 : i1 to i32
    %c0_i32_0 = arith.constant 0 : i32
    %2 = arith.cmpi ne, %1, %c0_i32_0 : i32
    scf.if %2 {
      %cst_16 = arith.constant 0.000000e+00 : f32
      %34 = vector.broadcast %cst_16 : f32 to vector<8x128xf32>
      %c0_17 = arith.constant 0 : index
      %c0_18 = arith.constant 0 : index
      %35 = vector.load %arg4[%c0_17, %c0_18] : memref<8x128xf32, #tpu.memory_space<vmem>>, vector<8x128xf32>
      tpu.vector_store %arg4[%c0_17, %c0_18], %34 {strides = array<i32>} : memref<8x128xf32, #tpu.memory_space<vmem>>, vector<8x128xf32>,
    } else {
    }
    %c0 = arith.constant 0 : index
    %c0_1 = arith.constant 0 : index
    %3 = vector.load %arg2[%c0, %c0_1] : memref<16x128xf32, #tpu.memory_space<vmem>>, vector<16x128xf32>
    %c0_2 = arith.constant 0 : index
    %c0_3 = arith.constant 0 : index
    %4 = vector.load %arg3[%c0_2, %c0_3] : memref<16x128xf32, #tpu.memory_space<vmem>>, vector<16x128xf32>
    %c0_4 = arith.constant 0 : index
    %c0_5 = arith.constant 0 : index
    %5 = vector.load %arg4[%c0_4, %c0_5] : memref<8x128xf32, #tpu.memory_space<vmem>>, vector<8x128xf32>
    %6 = math.log %3 : vector<16x128xf32>
    %cst = arith.constant -1.000000e+02 : f32
    %7 = vector.broadcast %cst : f32 to vector<16x128xf32>
    %8 = arith.maximumf %6, %7 : vector<16x128xf32>
    %cst_6 = arith.constant 1.000000e+00 : f32
    %9 = vector.broadcast %cst_6 : f32 to vector<16x128xf32>
    %10 = arith.subf %9, %3 : vector<16x128xf32>
    %11 = math.log %10 : vector<16x128xf32>
    %cst_7 = arith.constant -1.000000e+02 : f32
    %12 = vector.broadcast %cst_7 : f32 to vector<16x128xf32>
    %13 = arith.maximumf %11, %12 : vector<16x128xf32>
    %14 = arith.mulf %4, %8 : vector<16x128xf32>
    %cst_8 = arith.constant 1.000000e+00 : f32
    %15 = vector.broadcast %cst_8 : f32 to vector<16x128xf32>
    %16 = arith.subf %15, %4 : vector<16x128xf32>
    %17 = arith.mulf %16, %13 : vector<16x128xf32>
    %18 = arith.addf %14, %17 : vector<16x128xf32>
    %cst_9 = arith.constant 0.000000e+00 : f32
    %19 = vector.broadcast %cst_9 : f32 to vector<16x128xf32>
    %20 = arith.subf %19, %18 : vector<16x128xf32>
    %cst_10 = arith.constant 0.000000e+00 : f32
    %21 = vector.broadcast %cst_10 : f32 to vector<16x128xf32>
    %22 = arith.subf %21, %20 : vector<16x128xf32>
    %23 = math.exp %22 : vector<16x128xf32>
    %cst_11 = arith.constant 1.000000e+00 : f32
    %24 = vector.broadcast %cst_11 : f32 to vector<16x128xf32>
    %25 = arith.subf %24, %23 : vector<16x128xf32>
    %26 = arith.mulf %25, %25 : vector<16x128xf32>
    %cst_12 = arith.constant 2.500000e-01 : f32
    %27 = vector.broadcast %cst_12 : f32 to vector<16x128xf32>
    %28 = arith.mulf %27, %26 : vector<16x128xf32>
    %29 = arith.mulf %28, %20 : vector<16x128xf32>
    %30 = vector.shape_cast %29 : vector<16x128xf32> to vector<2x8x128xf32>
    %cst_13 = arith.constant dense<0.000000e+00> : vector<8x128xf32>
    %31 = vector.multi_reduction <add>, %30, %cst_13 [0] : vector<2x8x128xf32> to vector<8x128xf32>
    %32 = arith.addf %5, %31 : vector<8x128xf32>
    %c0_14 = arith.constant 0 : index
    %c0_15 = arith.constant 0 : index
    %33 = vector.load %arg4[%c0_14, %c0_15] : memref<8x128xf32, #tpu.memory_space<vmem>>, vector<8x128xf32>
    tpu.vector_store %arg4[%c0_14, %c0_15], %32 {strides = array<i32>} : memref<8x128xf32, #tpu.memory_space<vmem>>, vector<8x128xf32>,
    return
  }
  func.func @transform_0(%arg0: i32, %arg1: i32) -> (i32, i32) {
    %c1_i32 = arith.constant 1 : i32
    %0 = arith.muli %arg0, %c1_i32 : i32
    %1 = arith.addi %0, %arg1 : i32
    %c0_i32 = arith.constant 0 : i32
    %c0_i32_0 = arith.constant 0 : i32
    return %1, %c0_i32 : i32, i32
  }
  func.func @transform_1(%arg0: i32, %arg1: i32) -> (i32, i32) {
    %c1_i32 = arith.constant 1 : i32
    %0 = arith.muli %arg0, %c1_i32 : i32
    %1 = arith.addi %0, %arg1 : i32
    %c0_i32 = arith.constant 0 : i32
    %c0_i32_0 = arith.constant 0 : i32
    return %1, %c0_i32 : i32, i32
  }
  func.func @transform_2(%arg0: i32, %arg1: i32) -> (i32, i32) {
    %c0_i32 = arith.constant 0 : i32
    %c0_i32_0 = arith.constant 0 : i32
    return %arg0, %c0_i32 : i32, i32
  }
}

</mosaic_0001>

<bundles_post_ra>
// kernel: tpu_custom_call.1
= control target key start
LH: loop header
LB: loop body
LE: loop exit
PB: predicated region body
PF: predicated region fallthrough
CT: control target
= control target key end

     0   :  { %7 = vsyncpa [#allocation3], 0  ;;  %s232_s0 = inlined_call_operand.hbm [shape: f32[16,128], index: 0, kind: input, shape index: {}]   ;;  %s233_s1 = inlined_call_operand.hbm [shape: f32[16,128], index: 1, kind: input, shape index: {}]   ;;  %s234_s2 = inlined_call_operand.hbm [shape: f32[8,128], index: 2, kind: output, shape index: {}]  }
   0x1   :  { %8 = vsyncpa [#allocation6], 0 }
   0x2   :  { %9 = vsyncpa [#allocation4], 0  ;;  %s203_s9 = smov [#allocation2]  }
   0x3   :  { %s19_s10 = sshll.u32 %s203_s9, 4  ;;  %s20_s10 = int_to_ptr.vmem [resolvable:$true] %s19_s10 }
   0x4   :  { %s145_s11 = scalar_lea.vmem %s20_s10, 256  ;;  %p150_p1 = scmp.lt.s32.totalorder %s20_s10, %s20_s10 }
   0x5   :  { %p146_p0 = scmp.ne.s32.totalorder %s20_s10, %s145_s11  ;;  %p151_p2 = scmp.lt.s32.totalorder %s145_s11, %s145_s11 }
   0x7   :  { %p152_p3 = por %p151_p2, %p150_p1 }
   0x9   :  { %p153_p4 = pnand %p152_p3, %p146_p0 }
   0xb   :  { %156 = shalt.err (!%p153_p4)
}
   0xc   :  { %s204_s12 = smov 128   ;;  %s205_s13 = smov 8  }
   0xd   :  { %25 = dma.hbm_to_vmem [thread:$0]  %s232_s0, 256, %s20_s10, [#allocation3], %s204_s12, %s204_s12, %s205_s13  }
   0xe   :  { %s206_s16 = smov [#allocation5]  }
   0xf   :  { %s35_s17 = sshll.u32 %s206_s16, 4  ;;  %s36_s17 = int_to_ptr.vmem [resolvable:$true] %s35_s17 }
  0x10   :  { %s165_s18 = scalar_lea.vmem %s36_s17, 256  ;;  %p170_p6 = scmp.lt.s32.totalorder %s36_s17, %s36_s17 }
  0x11   :  { %p166_p5 = scmp.ne.s32.totalorder %s36_s17, %s165_s18  ;;  %p171_p7 = scmp.lt.s32.totalorder %s165_s18, %s165_s18 }
  0x13   :  { %p172_p8 = por %p171_p7, %p170_p6 }
  0x15   :  { %p173_p9 = pnand %p172_p8, %p166_p5 }
  0x17   :  { %176 = shalt.err (!%p173_p9)
}
  0x18   :  { %41 = dma.hbm_to_vmem [thread:$0]  %s233_s1, 256, %s36_s17, [#allocation6], %s204_s12, %s204_s12, %s205_s13  }
  0x19   :  { %197 = dma.done.wait [#allocation3], 256  }
  0x1a   :  { %198 = vsyncadd [#allocation3], 4294967040 }
  0x1b   :  { %199 = dma.done.wait [#allocation6], 256  }
  0x1c   :  { %200 = vsyncadd [#allocation6], 4294967040  ;;  %v57_v0 = vld [vmem:[#allocation2] sm:$0xff]  ;;  %v58_v1 = vld [vmem:[#allocation2 + $0x8] sm:$0xff]  ;;  %s207_s0 = smov [#allocation7]  }
  0x1d   :  { %125 = vlog2.f32 %v57_v0  ;;  %v68_v2 = vsub.f32 1.0, %v57_v0  ;;  %v69_v3 = vsub.f32 1.0, %v58_v1  ;;  %v59_v5 = vld [vmem:[#allocation5] sm:$0xff]  ;;  %v60_v7 = vld [vmem:[#allocation5 + $0x8] sm:$0xff]  ;;  %s109_s1 = sshll.u32 %s207_s0, 4  ;;  %s110_s1 = int_to_ptr.vmem [resolvable:$true] %s109_s1 }
  0x1e   :  { %127 = vlog2.f32 %v58_v1  ;;  %v78_v14 = vsub.f32 1.0, %v59_v5  ;;  %v79_v17 = vsub.f32 1.0, %v60_v7  ;;  %s177_s21 = scalar_lea.vmem %s110_s1, 128  ;;  %p182_p11 = scmp.lt.s32.totalorder %s110_s1, %s110_s1 }
  0x1f   :  { %129 = vlog2.f32 %v68_v2  ;;  %p178_p10 = scmp.ne.s32.totalorder %s110_s1, %s177_s21  ;;  %p183_p12 = scmp.lt.s32.totalorder %s177_s21, %s177_s21 }
  0x20   :  { %131 = vlog2.f32 %v69_v3 }
  0x21   :  { %p184_p13 = por %p183_p12, %p182_p11 }
  0x23   :  { %p185_p0 = pnand %p184_p13, %p178_p10 }
  0x2a   :  { %v126_v4 = vpop.eup %125 }
  0x2b   :  { %v128_v6 = vpop.eup %127  ;;  %v63_v8 = vmul.f32 0.6931472, %v126_v4 }
  0x2c   :  { %v130_v9 = vpop.eup %129  ;;  %v65_v10 = vmul.f32 0.6931472, %v128_v6 }
  0x2d   :  { %v132_v11 = vpop.eup %131  ;;  %v66_v12 = vmax.f32 %v63_v8, -100.0  ;;  %v71_v13 = vmul.f32 0.6931472, %v130_v9 }
  0x2e   :  { %v67_v15 = vmax.f32 %v65_v10, -100.0  ;;  %v73_v16 = vmul.f32 0.6931472, %v132_v11 }
  0x2f   :  { %v74_v18 = vmax.f32 %v71_v13, -100.0  ;;  %v76_v19 = vmul.f32 %v66_v12, %v59_v5 }
  0x30   :  { %v75_v20 = vmax.f32 %v73_v16, -100.0  ;;  %v77_v21 = vmul.f32 %v67_v15, %v60_v7 }
  0x31   :  { %v80_v22 = vmul.f32 %v78_v14, %v74_v18 }
  0x32   :  { %v81_v23 = vmul.f32 %v79_v17, %v75_v20 }
  0x33   :  { %v82_v24 = vadd.f32 %v80_v22, %v76_v19 }
  0x34   :  { %v83_v25 = vadd.f32 %v81_v23, %v77_v21 }
  0x35   :  { %v84_v26 = vsub.f32 0.0, %v82_v24 }
  0x36   :  { %v85_v27 = vsub.f32 0.0, %v83_v25 }
  0x37   :  { %v86_v28 = vsub.f32 0.0, %v84_v26 }
  0x38   :  { %v87_v29 = vsub.f32 0.0, %v85_v27 }
  0x39   :  { %v88_v30 = vmul.f32 1.442695, %v86_v28 }
  0x3a   :  { %v90_v31 = vmul.f32 1.442695, %v87_v29 }
  0x3b   :  { %133 = vpow2.f32 %v88_v30 }
  0x3c   :  { %135 = vpow2.f32 %v90_v31 }
  0x48   :  { %v134_v32 = vpop.eup %133 }
  0x49   :  { %v136_v33 = vpop.eup %135  ;;  %v92_v34 = vsub.f32 1.0, %v134_v32 }
  0x4a   :  { %v93_v35 = vsub.f32 1.0, %v136_v33 }
  0x4b   :  { %v94_v36 = vmul.f32 %v92_v34, %v92_v34 }
  0x4c   :  { %v95_v37 = vmul.f32 %v93_v35, %v93_v35 }
  0x4d   :  { %v96_v38 = vmul.f32 0.25, %v94_v36 }
  0x4e   :  { %v97_v39 = vmul.f32 0.25, %v95_v37 }
  0x4f   :  { %v98_v40 = vmul.f32 %v96_v38, %v84_v26 }
  0x50   :  { %v99_v41 = vmul.f32 %v97_v39, %v85_v27 }
  0x52   :  { %v100_v42 = vadd.f32 %v99_v41, %v98_v40 }
  0x54   :  { %102 = vst [vmem:[#allocation7] sm:$0xff] %v100_v42 }
  0x55   :  { %188 = shalt.err (!%p185_p0)
}
  0x56   :  { %112 = dma.vmem_to_hbm [thread:$0]  %s110_s1, 128, %s234_s2, [#allocation4]  }
  0x57   :  { %201 = dma.done.wait [#allocation4], 128  }
  0x58   :  { %202 = vsyncadd [#allocation4], 4294967168 }
  0x59   :  { %116 = vsyncpa [#allocation3], 1 }
  0x5a   :  { %117 = vsyncpa [#allocation6], 1 }
  0x5b   :  { %118 = vsyncpa [#allocation4], 1 }

</bundles_post_ra>
